<compile_context>
chip_gen: v6e
topology: v6e:2x2x1
jax: 0.10.0
libtpu: 0.0.40
codegen_flags: <defaults>
</compile_context>

<pallas_src>
import jax
import jax.numpy as jnp
from jax.experimental import pallas as pl
from jax.experimental.pallas import tpu as pltpu

EPS = 1e-5


# ------------------------------ Pallas kernel --------------------------------
def channel_att_kernel(x_ref, a_ref, c_ref, o_ref):
    """out = sigmoid(x*a + c) * x ; a/c are per-row (= per-channel) scalars."""
    x = x_ref[...]
    y = x * a_ref[...] + c_ref[...]          # BN affine * NAM weight, folded
    o_ref[...] = (jax.nn.sigmoid(y) * x).astype(o_ref.dtype)


# ------------------------------ tiling helper ---------------------------------
def _pick_tile(total, unit, max_tile):
    """Largest multiple of `unit` that divides `total` and is <= max_tile.
    Falls back to the full extent (always legal for a BlockSpec)."""
    if total % unit != 0:
        return total
    t = min(max_tile, total)
    t = (t // unit) * unit
    while t >= unit:
        if total % t == 0:
            return t
        t -= unit
    return total


# ------------------------------ wrapper ---------------------------------------
def channel_att(x_nchw, gamma, beta, mean, var, eps=EPS):
    n, c, h, w = x_nchw.shape
    m, hw = n * c, h * w

    # Fold inference BatchNorm + NAM channel weight into 2 per-channel scalars.
    scale = gamma / jnp.sqrt(var + eps)
    shift = beta - mean * scale
    wbn = jnp.abs(gamma) / jnp.sum(jnp.abs(gamma))
    a = (scale * wbn).astype(jnp.float32)
    cc = (shift * wbn).astype(jnp.float32)

    # Row r = n*C + ch  ->  channel = r % C ; per-row scalar broadcast over lanes.
    a_rows = jnp.tile(a, n).reshape(m, 1)
    c_rows = jnp.tile(cc, n).reshape(m, 1)

    xf = x_nchw.reshape(m, hw)           # rows = N*C, lanes = H*W (lane-dense)

    # Largest aligned tiles that divide the problem; ~<=2 MB f32 per x block,
    # so double-buffered in + out stays well under every chip's VMEM budget.
    row_tile = _pick_tile(m, 8, 256)
    lane_tile = _pick_tile(hw, 128, 2048)
    grid = (m // row_tile, hw // lane_tile)

    out = pl.pallas_call(
        channel_att_kernel,
        out_shape=jax.ShapeDtypeStruct((m, hw), x_nchw.dtype),
        grid=grid,
        in_specs=[
            pl.BlockSpec((row_tile, lane_tile), lambda i, j: (i, j)),
            pl.BlockSpec((row_tile, 1), lambda i, j: (i, 0)),
            pl.BlockSpec((row_tile, 1), lambda i, j: (i, 0)),
        ],
        out_specs=pl.BlockSpec((row_tile, lane_tile), lambda i, j: (i, j)),
        compiler_params=pltpu.CompilerParams(
            dimension_semantics=("parallel", "parallel")),
    )(xf, a_rows, c_rows)
    return out.reshape(n, c, h, w)


def att_forward(x_nchw, params):
    """Att.forward == Channel_Att.forward (the Att wrapper adds nothing else)."""
    return channel_att(x_nchw, *params)


# ------------------------------ pure-JAX reference ----------------------------
def channel_att_ref(x, gamma, beta, mean, var, eps=EPS):
    scale = (gamma / jnp.sqrt(var + eps))[None, :, None, None]
    shift = (beta - mean * (gamma / jnp.sqrt(var + eps)))[None, :, None, None]
    y = x * scale + shift
    wbn = (jnp.abs(gamma) / jnp.sum(jnp.abs(gamma)))[None, :, None, None]
    return jax.nn.sigmoid(y * wbn) * x


# ------------------------------ main -------------------------------------------
if __name__ == "__main__":
    N, C, H, W = 2, 4, 16, 16
    key = jax.random.PRNGKey(0)
    kx, kg, kb, km, kv = jax.random.split(key, 5)

    x = jax.random.normal(kx, (N, C, H, W), jnp.float32)   # NCHW like PyTorch
    gamma = 1.0 + 0.1 * jax.random.normal(kg, (C,), jnp.float32)
    beta = 0.1 * jax.random.normal(kb, (C,), jnp.float32)
    mean = 0.05 * jax.random.normal(km, (C,), jnp.float32)
    var = 1.0 + 0.1 * jnp.abs(jax.random.normal(kv, (C,), jnp.float32))
    params = (gamma, beta, mean, var)

    out = jax.block_until_ready(att_forward(x, params))
    assert out.shape == (N, C, H, W), out.shape
    assert jnp.all(jnp.isfinite(out))

    ref = channel_att_ref(x, *params)
    assert jnp.allclose(out, ref, atol=1e-5, rtol=1e-5), float(
        jnp.max(jnp.abs(out - ref)))

    print("KERNEL_OK")
</pallas_src>

<mosaic_0001>
module attributes {stable_mosaic.version = 11 : i64} {
  func.func @channel_att_kernel(%arg0: i32, %arg1: i32, %arg2: memref<8x256xf32, #tpu.memory_space<vmem>>, %arg3: memref<8x1xf32, #tpu.memory_space<vmem>>, %arg4: memref<8x1xf32, #tpu.memory_space<vmem>>, %arg5: memref<8x256xf32, #tpu.memory_space<vmem>>) attributes {dimension_semantics = [#tpu.dimension_semantics<parallel>, #tpu.dimension_semantics<parallel>], iteration_bounds = array<i64: 1, 1>, scalar_prefetch = 0 : i64, scratch_operands = 0 : i64, tpu.core_type = #tpu.core_type<tc>, window_params = [{transform_indices = @transform_0, window_bounds = array<i64: 8, 256>}, {transform_indices = @transform_1, window_bounds = array<i64: 8, 1>}, {transform_indices = @transform_2, window_bounds = array<i64: 8, 1>}, {transform_indices = @transform_3, window_bounds = array<i64: 8, 256>}]} {
    %c0 = arith.constant 0 : index
    %c0_0 = arith.constant 0 : index
    %0 = vector.load %arg2[%c0, %c0_0] : memref<8x256xf32, #tpu.memory_space<vmem>>, vector<8x256xf32>
    %c0_1 = arith.constant 0 : index
    %c0_2 = arith.constant 0 : index
    %1 = vector.load %arg3[%c0_1, %c0_2] : memref<8x1xf32, #tpu.memory_space<vmem>>, vector<8x1xf32>
    %2 = vector.broadcast %1 : vector<8x1xf32> to vector<8x256xf32>
    %3 = arith.mulf %0, %2 : vector<8x256xf32>
    %c0_3 = arith.constant 0 : index
    %c0_4 = arith.constant 0 : index
    %4 = vector.load %arg4[%c0_3, %c0_4] : memref<8x1xf32, #tpu.memory_space<vmem>>, vector<8x1xf32>
    %5 = vector.broadcast %4 : vector<8x1xf32> to vector<8x256xf32>
    %6 = arith.addf %3, %5 : vector<8x256xf32>
    %7 = arith.negf %6 : vector<8x256xf32>
    %8 = math.exp %7 : vector<8x256xf32>
    %cst = arith.constant 1.000000e+00 : f32
    %9 = vector.broadcast %cst : f32 to vector<8x256xf32>
    %10 = arith.addf %9, %8 : vector<8x256xf32>
    %11 = arith.divf %9, %10 : vector<8x256xf32>
    %12 = arith.mulf %11, %0 : vector<8x256xf32>
    %c0_5 = arith.constant 0 : index
    %c0_6 = arith.constant 0 : index
    %13 = vector.load %arg5[%c0_5, %c0_6] : memref<8x256xf32, #tpu.memory_space<vmem>>, vector<8x256xf32>
    tpu.vector_store %arg5[%c0_5, %c0_6], %12 {strides = array<i32>} : memref<8x256xf32, #tpu.memory_space<vmem>>, vector<8x256xf32>,
    return
  }
  func.func @transform_0(%arg0: i32, %arg1: i32) -> (i32, i32) {
    %c0_i32 = arith.constant 0 : i32
    return %arg0, %arg1 : i32, i32
  }
  func.func @transform_1(%arg0: i32, %arg1: i32) -> (i32, i32) {
    %c0_i32 = arith.constant 0 : i32
    %c0_i32_0 = arith.constant 0 : i32
    return %arg0, %c0_i32 : i32, i32
  }
  func.func @transform_2(%arg0: i32, %arg1: i32) -> (i32, i32) {
    %c0_i32 = arith.constant 0 : i32
    %c0_i32_0 = arith.constant 0 : i32
    return %arg0, %c0_i32 : i32, i32
  }
  func.func @transform_3(%arg0: i32, %arg1: i32) -> (i32, i32) {
    %c0_i32 = arith.constant 0 : i32
    return %arg0, %arg1 : i32, i32
  }
}

</mosaic_0001>

<bundles_post_ra>
// kernel: tpu_custom_call.1
= control target key start
LH: loop header
LB: loop body
LE: loop exit
PB: predicated region body
PF: predicated region fallthrough
CT: control target
= control target key end

     0   :  { %v98_v1 = vmov 0   ;;  %s135_s0 = inlined_call_operand.vmem [shape: f32[8,256], index: 0, kind: input, shape index: {}]   ;;  %s136_s1 = inlined_call_operand.vmem [shape: f32[8,1], index: 1, kind: input, shape index: {}]   ;;  %s137_s2 = inlined_call_operand.vmem [shape: f32[8,1], index: 2, kind: input, shape index: {}]   ;;  %s138_s3 = inlined_call_operand.hbm [shape: f32[8,256], index: 3, kind: output, shape index: {}]  }
   0x1   :  { %v17_v0 = vld [vmem:[%s136_s1] sm:$0xff]  ;;  %67 = vset.pattern.permute.xlu0 %v98_v1 }
   0x2   :  { %8 = vsyncpa [#allocation3], 0  ;;  %20 = vperm.xlu0 %67, %v17_v0   ;;  %v25_v2 = vld [vmem:[%s137_s2] sm:$0xff]  ;;  %v16_v5 = vld [vmem:[%s135_s0 + $0x8] sm:$0xff]  ;;  %s99_s1 = smov [#allocation2]  }
   0x3   :  { %v15_v4 = vld [vmem:[%s135_s0] sm:$0xff]  ;;  %s55_s2 = sshll.u32 %s99_s1, 4  ;;  %s56_s2 = int_to_ptr.vmem [resolvable:$true] %s55_s2 }
   0x4   :  { %s76_s0 = scalar_lea.vmem %s56_s2, 256  ;;  %p81_p1 = scmp.lt.s32.totalorder %s56_s2, %s56_s2 }
   0x5   :  { %p77_p0 = scmp.ne.s32.totalorder %s56_s2, %s76_s0  ;;  %p82_p2 = scmp.lt.s32.totalorder %s76_s0, %s76_s0 }
   0x6   :  { %28 = vperm.xlu0 %67, %v25_v2  }
   0x7   :  { %p83_p3 = por %p82_p2, %p81_p1 }
   0x9   :  { %p84_p4 = pnand %p83_p3, %p77_p0 }
  0x7d   :  { %v21_v3 = vpop.permute.xlu0 %20 }
  0x7e   :  { %v23_v6 = vmul.f32 %v21_v3, %v15_v4  ;;  %v24_v7 = vmul.f32 %v21_v3, %v16_v5 }
  0x81   :  { %v29_v8 = vpop.permute.xlu0 %28 }
  0x82   :  { %v31_v9 = vadd.f32 %v29_v8, %v23_v6  ;;  %v32_v10 = vadd.f32 %v29_v8, %v24_v7 }
  0x84   :  { %v63_v11 = vmul.f32 -1.442695, %v31_v9  ;;  %v64_v12 = vmul.f32 -1.442695, %v32_v10 }
  0x86   :  { %68 = vpow2.f32 %v63_v11 }
  0x87   :  { %70 = vpow2.f32 %v64_v12 }
  0x93   :  { %v69_v13 = vpop.eup %68 }
  0x94   :  { %v71_v14 = vpop.eup %70  ;;  %v39_v15 = vadd.f32 1.0, %v69_v13 }
  0x95   :  { %v40_v16 = vadd.f32 1.0, %v71_v14 }
  0x96   :  { %72 = vrcp.f32 %v39_v15 }
  0x97   :  { %74 = vrcp.f32 %v40_v16 }
  0xa3   :  { %v73_v17 = vpop.eup %72 }
  0xa4   :  { %v75_v18 = vpop.eup %74  ;;  %v45_v19 = vmul.f32 %v73_v17, %v15_v4 }
  0xa5   :  { %v46_v20 = vmul.f32 %v75_v18, %v16_v5 }
  0xa6   :  { %47 = vst [vmem:[#allocation2] sm:$0xff] %v45_v19 }
  0xa7   :  { %48 = vst [vmem:[#allocation2 + $0x8] sm:$0xff] %v46_v20 }
  0xa8   :  { %87 = shalt.err (!%p84_p4)
}
  0xa9   :  { %58 = dma.vmem_to_hbm [thread:$0]  %s56_s2, 256, %s138_s3, [#allocation3]  }
  0xaa   :  { %96 = dma.done.wait [#allocation3], 256  }
  0xab   :  { %97 = vsyncadd [#allocation3], 4294967040 }
  0xac   :  { %62 = vsyncpa [#allocation3], 1 }

</bundles_post_ra>
